<compile_context>
chip_gen: v7x
topology: tpu7x:2x2x1
jax: 0.10.0
libtpu: 0.0.40
codegen_flags: <defaults>
</compile_context>

<pallas_src>
import functools

import jax
import jax.numpy as jnp
from jax import lax
from jax.experimental import pallas as pl
from jax.experimental.pallas import tpu as pltpu


def _sq_loss_kernel(x_ref, lab_ref, out_ref, acc_ref, *, num_classes):
    i = pl.program_id(1)                # batch-block index within this partition
    j = pl.program_id(2)                # class-tile index
    nb = pl.num_programs(1)
    nc = pl.num_programs(2)

    @pl.when((i == 0) & (j == 0))
    def _init():
        acc_ref[...] = jnp.zeros_like(acc_ref)

    x = x_ref[...].astype(jnp.float32)  # (block_n, tc); no-op cast for f32 inputs
    labels = lab_ref[...]               # (block_n, 1) int32; padded rows carry -1
    bn, tc = x.shape

    # One-hot built on the fly against the *global* class index of this tile.
    cols = j * tc + lax.broadcasted_iota(jnp.int32, (bn, tc), 1)
    onehot = (cols == labels).astype(jnp.float32)
    diff = x - onehot

    # Per-lane partial sums only (sublane reduce); defer the cross-lane reduce,
    # the 1/C scale, and the output store to the single finalize step.
    acc_ref[...] += jnp.sum(diff * diff, axis=0, keepdims=True)

    @pl.when((i == nb - 1) & (j == nc - 1))
    def _finalize():
        total = jnp.sum(acc_ref[...]) * (1.0 / num_classes)
        out_ref[...] = jnp.zeros_like(out_ref) + total


def _pick_class_tile(num_classes):
    """Full row for small heads; lane-dense 128-multiple tiles for huge ones."""
    if num_classes >= 4096:
        for tc in (2048, 1024, 512):
            if num_classes % tc == 0:
                return tc
    return num_classes


def _round_up(x, m):
    return -(-x // m) * m


def classification_squared_loss(inputs, labels, *, vmem_budget_bytes=8 * 1024 * 1024):
    """inputs: (N, C) float, labels: (N,) int -> scalar float32 loss."""
    N, C = inputs.shape
    labels = labels.astype(jnp.int32)

    tc = _pick_class_tile(C)
    nc = C // tc

    # Batch tile: biggest multiple of 8 such that the double-buffered input
    # tile stays well inside every generation's scoped-VMEM budget (v5e 16 MiB
    # default scoped, v7x 64 MiB physical), capped at 2048 rows and at ~half
    # the batch so the two-way parallel split stays useful.
    bytes_per_row = tc * 4
    max_rows_vmem = max(8, (vmem_budget_bytes // (2 * bytes_per_row)) // 8 * 8)
    half_batch = max(8, _round_up(-(-N // 2), 8))
    block_n = int(min(max_rows_vmem, 2048, half_batch, _round_up(max(N, 8), 8)))

    # Two "parallel" partitions of the batch blocks -> both v7x TensorCores
    # stream half the batch each (no effect on single-core v5e/v6e).
    nb_total = -(-N // block_n)
    num_parts = 2 if nb_total >= 2 else 1

    n_pad = _round_up(N, block_n * num_parts)
    if n_pad != N:
        # Padded rows: inputs = 0, label = -1 -> (0 - 0)^2 contributes nothing.
        inputs = jnp.pad(inputs, ((0, n_pad - N), (0, 0)))
        labels = jnp.pad(labels, (0, n_pad - N), constant_values=-1)
    labels2d = labels.reshape(n_pad, 1)
    nb = n_pad // (block_n * num_parts)

    kernel = functools.partial(_sq_loss_kernel, num_classes=C)

    partials = pl.pallas_call(
        kernel,
        out_shape=jax.ShapeDtypeStruct((num_parts, 1, 1), jnp.float32),
        grid=(num_parts, nb, nc),
        in_specs=[
            pl.BlockSpec((block_n, tc), lambda p, i, j: (p * nb + i, j)),
            pl.BlockSpec((block_n, 1), lambda p, i, j: (p * nb + i, 0)),
        ],
        out_specs=pl.BlockSpec((1, 1, 1), lambda p, i, j: (p, 0, 0)),
        scratch_shapes=[pltpu.VMEM((1, tc), jnp.float32)],
        compiler_params=pltpu.CompilerParams(
            dimension_semantics=("parallel", "arbitrary", "arbitrary"),
            vmem_limit_bytes=32 * 1024 * 1024,
        ),
    )(inputs, labels2d)

    return jnp.sum(partials)


def _reference(inputs, labels):
    C = inputs.shape[1]
    onehot = jax.nn.one_hot(labels, C, dtype=jnp.float32)
    return jnp.sum((inputs.astype(jnp.float32) - onehot) ** 2) / C


if __name__ == "__main__":
    key = jax.random.PRNGKey(0)

    # (64, 32): exercises the 2-way parallel batch partition.
    # (10, 12): exercises batch padding (N not a multiple of the tile).
    for (N, C) in [(64, 32), (10, 12)]:
        kx, ky = jax.random.split(jax.random.fold_in(key, N))
        inputs = jax.random.normal(kx, (N, C), dtype=jnp.float32)
        labels = jax.random.randint(ky, (N,), 0, C, dtype=jnp.int32)

        out = classification_squared_loss(inputs, labels)
        out = jax.block_until_ready(out)

        ref = _reference(inputs, labels)
        assert jnp.allclose(out, ref, rtol=1e-5, atol=1e-5), (N, C, out, ref)

    print("KERNEL_OK")
</pallas_src>

<mosaic_0001>
module attributes {stable_mosaic.version = 11 : i64} {
  func.func @_sq_loss_kernel(%arg0: i32, %arg1: i32, %arg2: i32, %arg3: memref<32x32xf32, #tpu.memory_space<vmem>>, %arg4: memref<32x1xi32, #tpu.memory_space<vmem>>, %arg5: memref<1x1x1xf32, #tpu.memory_space<vmem>>, %arg6: memref<1x32xf32, #tpu.memory_space<vmem>>) attributes {dimension_semantics = [#tpu.dimension_semantics<parallel>, #tpu.dimension_semantics<arbitrary>, #tpu.dimension_semantics<arbitrary>], iteration_bounds = array<i64: 2, 1, 1>, scalar_prefetch = 0 : i64, scratch_operands = 1 : i64, tpu.core_type = #tpu.core_type<tc>, window_params = [{transform_indices = @transform_0, window_bounds = array<i64: 32, 32>}, {transform_indices = @transform_1, window_bounds = array<i64: 32, 1>}, {transform_indices = @transform_2, window_bounds = array<i64: 1, 1, 1>}]} {
    %c0_i32 = arith.constant 0 : i32
    %0 = arith.cmpi eq, %arg1, %c0_i32 : i32
    %c0_i32_0 = arith.constant 0 : i32
    %1 = arith.cmpi eq, %arg2, %c0_i32_0 : i32
    %2 = arith.andi %0, %1 : i1
    %3 = arith.extui %2 : i1 to i32
    %c0_i32_1 = arith.constant 0 : i32
    %4 = arith.cmpi ne, %3, %c0_i32_1 : i32
    scf.if %4 {
      %cst_12 = arith.constant 0.000000e+00 : f32
      %27 = vector.broadcast %cst_12 : f32 to vector<1x32xf32>
      %c0_13 = arith.constant 0 : index
      %c0_14 = arith.constant 0 : index
      %28 = vector.load %arg6[%c0_13, %c0_14] : memref<1x32xf32, #tpu.memory_space<vmem>>, vector<1x32xf32>
      tpu.vector_store %arg6[%c0_13, %c0_14], %27 {strides = array<i32>} : memref<1x32xf32, #tpu.memory_space<vmem>>, vector<1x32xf32>,
    } else {
    }
    %c0 = arith.constant 0 : index
    %c0_2 = arith.constant 0 : index
    %5 = vector.load %arg3[%c0, %c0_2] : memref<32x32xf32, #tpu.memory_space<vmem>>, vector<32x32xf32>
    %c0_3 = arith.constant 0 : index
    %c0_4 = arith.constant 0 : index
    %6 = vector.load %arg4[%c0_3, %c0_4] : memref<32x1xi32, #tpu.memory_space<vmem>>, vector<32x1xi32>
    %c32_i32 = arith.constant 32 : i32
    %7 = arith.muli %arg2, %c32_i32 : i32
    %8 = tpu.iota {dimensions = array<i32: 1>} : vector<32x32xi32>
    %9 = vector.broadcast %7 : i32 to vector<32x32xi32>
    %10 = arith.addi %9, %8 : vector<32x32xi32>
    %11 = vector.broadcast %6 : vector<32x1xi32> to vector<32x32xi32>
    %12 = arith.cmpi eq, %10, %11 : vector<32x32xi32>
    %13 = arith.extui %12 : vector<32x32xi1> to vector<32x32xi32>
    %14 = arith.sitofp %13 : vector<32x32xi32> to vector<32x32xf32>
    %15 = arith.subf %5, %14 : vector<32x32xf32>
    %c0_5 = arith.constant 0 : index
    %c0_6 = arith.constant 0 : index
    %16 = vector.load %arg6[%c0_5, %c0_6] : memref<1x32xf32, #tpu.memory_space<vmem>>, vector<1x32xf32>
    %17 = arith.mulf %15, %15 : vector<32x32xf32>
    %cst = arith.constant dense<0.000000e+00> : vector<32xf32>
    %18 = vector.multi_reduction <add>, %17, %cst [0] : vector<32x32xf32> to vector<32xf32>
    %19 = vector.shape_cast %18 : vector<32xf32> to vector<1x32xf32>
    %20 = arith.addf %16, %19 : vector<1x32xf32>
    %c0_7 = arith.constant 0 : index
    %c0_8 = arith.constant 0 : index
    %21 = vector.load %arg6[%c0_7, %c0_8] : memref<1x32xf32, #tpu.memory_space<vmem>>, vector<1x32xf32>
    tpu.vector_store %arg6[%c0_7, %c0_8], %20 {strides = array<i32>} : memref<1x32xf32, #tpu.memory_space<vmem>>, vector<1x32xf32>,
    %c0_i32_9 = arith.constant 0 : i32
    %22 = arith.cmpi eq, %arg1, %c0_i32_9 : i32
    %c0_i32_10 = arith.constant 0 : i32
    %23 = arith.cmpi eq, %arg2, %c0_i32_10 : i32
    %24 = arith.andi %22, %23 : i1
    %25 = arith.extui %24 : i1 to i32
    %c0_i32_11 = arith.constant 0 : i32
    %26 = arith.cmpi ne, %25, %c0_i32_11 : i32
    scf.if %26 {
      %c0_12 = arith.constant 0 : index
      %c0_13 = arith.constant 0 : index
      %27 = vector.load %arg6[%c0_12, %c0_13] : memref<1x32xf32, #tpu.memory_space<vmem>>, vector<1x32xf32>
      %28 = vector.shape_cast %27 : vector<1x32xf32> to vector<1x1x32xf32>
      %cst_14 = arith.constant dense<0.000000e+00> : vector<1xf32>
      %29 = vector.multi_reduction <add>, %28, %cst_14 [1, 2] : vector<1x1x32xf32> to vector<1xf32>
      %30 = vector.shape_cast %29 : vector<1xf32> to vector<1x1x1xf32>
      %31 = vector.extract %30[0, 0, 0] : f32 from vector<1x1x1xf32>
      %cst_15 = arith.constant 3.125000e-02 : f32
      %32 = arith.mulf %31, %cst_15 : f32
      %cst_16 = arith.constant 0.000000e+00 : f32
      %33 = vector.broadcast %cst_16 : f32 to vector<1x1x1xf32>
      %34 = vector.broadcast %32 : f32 to vector<1x1x1xf32>
      %35 = arith.addf %33, %34 : vector<1x1x1xf32>
      %c0_17 = arith.constant 0 : index
      %c0_18 = arith.constant 0 : index
      %c0_19 = arith.constant 0 : index
      %36 = vector.load %arg5[%c0_17, %c0_18, %c0_19] : memref<1x1x1xf32, #tpu.memory_space<vmem>>, vector<1x1x1xf32>
      tpu.vector_store %arg5[%c0_17, %c0_18, %c0_19], %35 {strides = array<i32>} : memref<1x1x1xf32, #tpu.memory_space<vmem>>, vector<1x1x1xf32>,
    } else {
    }
    return
  }
  func.func @transform_0(%arg0: i32, %arg1: i32, %arg2: i32) -> (i32, i32) {
    %c1_i32 = arith.constant 1 : i32
    %0 = arith.muli %arg0, %c1_i32 : i32
    %1 = arith.addi %0, %arg1 : i32
    %c0_i32 = arith.constant 0 : i32
    return %1, %arg2 : i32, i32
  }
  func.func @transform_1(%arg0: i32, %arg1: i32, %arg2: i32) -> (i32, i32) {
    %c1_i32 = arith.constant 1 : i32
    %0 = arith.muli %arg0, %c1_i32 : i32
    %1 = arith.addi %0, %arg1 : i32
    %c0_i32 = arith.constant 0 : i32
    %c0_i32_0 = arith.constant 0 : i32
    return %1, %c0_i32 : i32, i32
  }
  func.func @transform_2(%arg0: i32, %arg1: i32, %arg2: i32) -> (i32, i32, i32) {
    %c0_i32 = arith.constant 0 : i32
    %c0_i32_0 = arith.constant 0 : i32
    %c0_i32_1 = arith.constant 0 : i32
    return %arg0, %c0_i32, %c0_i32_0 : i32, i32, i32
  }
}

</mosaic_0001>

<bundles_post_ra>
// kernel: tpu_custom_call.1
= control target key start
LH: loop header
LB: loop body
LE: loop exit
PB: predicated region body
PF: predicated region fallthrough
CT: control target
= control target key end

     0   :  { %s456_s9 = smov 0   ;;  %s458_s10 = smov 0   ;;  %s500_s0 = inlined_call_operand.vmem [shape: f32[64,32], index: 0, kind: input, shape index: {}]   ;;  %s501_s1 = inlined_call_operand.vmem [shape: s32[64,1], index: 1, kind: input, shape index: {}]   ;;  %s502_s2 = inlined_call_operand.vmem [shape: f32[2,1,1], index: 2, kind: output, shape index: {}]  }
   0x1   :  { %s460_s11 = smov 0  }
   0x2 LB: > { %s31_s12 = sadd.s32 1, %s433_s10  ;;  %p374_p0 = scmp.ge.s32.totalorder %s437_s11, 1  ;;  %s437_s11 = sphi %s460_s11, %s12_s11   ;;  %s433_s10 = sphi %s458_s10, %s504_s10   ;;  %s429_s9 = sphi %s456_s9, %s503_s9  }
   0x3   : > { %p33_p1 = scmp.ge.s32.totalorder %s31_s12, 2  ;;  %p156_p2 = scmp.lt.s32.totalorder %s437_s11, 3 }
   0x5   : > { %s506_s12 = smov (%p33_p1, %s31_s12), 0  ;;  %p157_p3 = pnand %p374_p0, %p156_p2 }
   0x6   : > { %s375_s13 = sshll.u32 (!%p157_p3), %s429_s9, 2  ;;  %v439_v0 = vmov (!%p157_p3), 0   ;;  %vm214_vm0 = vcmask (!%p157_p3), 253952   ;;  %v440_v5 = vmov (!%p157_p3), 0.0   ;;  %v225_v6 = vlaneseq (!%p157_p3)  ;;  %p205_p5 = scmp.lt.s32.totalorder (!%p157_p3), %s429_s9, 1 }
   0x7   : > { %160 = sbr.rel (%p157_p3) target bundleno = 394 (0x18a), region = 28  ;;  %414 = vset.pattern.permute.xlu1 (!%p157_p3), %v439_v0  ;;  %413 = vset.pattern.permute.xlu0 (!%p157_p3), %v439_v0  ;;  %p188_p4 = scmp.lt.s32.totalorder (!%p157_p3), %s375_s13, 7  ;;  %215 = vst.msk [vmem:[#allocation2] sm:$0x1] (!%p157_p3), %vm214_vm0, %v440_v5  ;;  %vm262_vm5 = vcmask (!%p157_p3), 261120   ;;  %vm295_vm6 = vcmask (!%p157_p3), 0  }
   0x8   : > { %v226_v7 = vand.u32 (!%p157_p3), 127, %v225_v6 }
   0xe   : > { %s508_s13 = smov (!%p188_p4, %s375_s13), 7  ;;  %v257_v40 = vld [vmem:[#allocation2] sm:$0x1]  ;;  %s510_s9 = smov (!%p205_p5, %s429_s9), 1 }
   0xf   : > { %s376_s14 = sshll.u32 %s508_s13, 3  ;;  %s207_s24 = scalar_lea.vmem %s502_s2, %s510_s9 }
  0x10   : > { %s202_s17 = scalar_lea.vmem %s501_s1, %s376_s14  ;;  %s194_s20 = scalar_lea.vmem %s500_s0, %s376_s14 }
  0x11   : > { %v222_v1 = vld [vmem:[%s202_s17 + $0x10] sm:$0xff]  ;;  %v220_v2 = vld [vmem:[%s202_s17] sm:$0xff]  ;;  %v223_v3 = vld [vmem:[%s202_s17 + $0x18] sm:$0xff] }
  0x12   : > { %236 = vperm.xlu1 %414, %v222_v1   ;;  %230 = vperm.xlu0 %413, %v220_v2   ;;  %v221_v4 = vld [vmem:[%s202_s17 + $0x8] sm:$0xff]  ;;  %v216_v10 = vld [vmem:[%s194_s20] sm:$0xff]  ;;  %v218_v11 = vld [vmem:[%s194_s20 + $0x10] sm:$0xff] }
  0x13   : > { %v219_v16 = vld [vmem:[%s194_s20 + $0x18] sm:$0xff]  ;;  %v217_v18 = vld [vmem:[%s194_s20 + $0x8] sm:$0xff] }
  0x16   : > { %239 = vperm.xlu1 %414, %v223_v3   ;;  %233 = vperm.xlu0 %413, %v221_v4  }
  0x91   : > { %v237_v8 = vpop.permute.xlu1 %236  ;;  %v231_v9 = vpop.permute.xlu0 %230 }
  0x92   : > { %vm243_vm1 = vcmp.eq.s32.totalorder %v226_v7, %v237_v8  ;;  %vm241_vm2 = vcmp.eq.s32.totalorder %v226_v7, %v231_v9 }
  0x93   : > { %v381_v12 = vsel %vm243_vm1, 1.0, %v440_v5  ;;  %v379_v13 = vsel %vm241_vm2, 1.0, %v440_v5 }
  0x94   : > { %v253_v14 = vsub.f32 %v216_v10, %v379_v13  ;;  %v255_v19 = vsub.f32 %v218_v11, %v381_v12 }
  0x95   : > { %v240_v15 = vpop.permute.xlu1 %239  ;;  %v234_v17 = vpop.permute.xlu0 %233 }
  0x96   : > { %vm244_vm3 = vcmp.eq.s32.totalorder %v226_v7, %v240_v15  ;;  %vm242_vm4 = vcmp.eq.s32.totalorder %v226_v7, %v234_v17  ;;  %v258_v22 = vmul.f32 %v253_v14, %v253_v14  ;;  %v260_v25 = vmul.f32 %v255_v19, %v255_v19 }
  0x97   : > { %v382_v20 = vsel %vm244_vm3, 1.0, %v440_v5  ;;  %v380_v21 = vsel %vm242_vm4, 1.0, %v440_v5 }
  0x98   : > { %v256_v23 = vsub.f32 %v219_v16, %v382_v20  ;;  %v254_v24 = vsub.f32 %v217_v18, %v380_v21  ;;  %v263_v27 = vsel %vm262_vm5, %v258_v22, 0.0  ;;  %v266_v31 = vsel %vm262_vm5, %v260_v25, 0.0 }
  0x9a   : > { %v259_v26 = vmul.f32 %v254_v24, %v254_v24  ;;  %v261_v28 = vmul.f32 %v256_v23, %v256_v23 }
  0x9c   : > { %v264_v29 = vsel %vm262_vm5, %v259_v26, 0.0  ;;  %v268_v33 = vsel %vm262_vm5, %v261_v28, 0.0 }
  0x9d   : > { %v265_v30 = vadd.f32 %v264_v29, %v263_v27 }
  0x9f   : > { %v267_v32 = vadd.f32 %v266_v31, %v265_v30 }
  0xa1   : > { %v269_v34 = vadd.f32 %v268_v33, %v267_v32 }
  0xa3   : > { %v270_v35 = vrot.slane %v269_v34, 4 }
  0xa5   : > { %v271_v36 = vadd.f32 %v270_v35, %v269_v34 }
  0xa7   : > { %v272_v37 = vrot.slane %v271_v36, 2 }
  0xa9   : > { %v273_v38 = vadd.f32 %v272_v37, %v271_v36 }
  0xab   : > { %v274_v39 = vrot.slane %v273_v38, 1 }
  0xad   : > { %v275_v41 = vadd.f32 %v274_v39, %v273_v38 }
  0xaf   : > { %v276_v42 = vadd.f32 %v275_v41, %v257_v40 }
  0xb1   : > { %278 = vst.msk [vmem:[#allocation2] sm:$0x1] %vm214_vm0, %v276_v42 }
  0xb8   : > { %v281_v43 = vld [vmem:[#allocation2] sm:$0x1] }
  0xb9   : > { %v282_v44 = vsel %vm214_vm0, %v281_v43, 0.0 }
  0xba   : > { %283 = vadd.xlane.f32.xlu0 %v282_v44 }
 0x147   : > { %v284_v45 = vpop.xlane.xlu0 %283 }
 0x148   : > { %v285_v46 = vrot.slane %v284_v45, 4 }
 0x14a   : > { %v286_v47 = vadd.f32 %v285_v46, %v284_v45 }
 0x14c   : > { %v287_v48 = vrot.slane %v286_v47, 2 }
 0x14e   : > { %v288_v49 = vadd.f32 %v287_v48, %v286_v47 }
 0x150   : > { %v289_v50 = vrot.slane %v288_v49, 1 }
 0x152   : > { %v290_v51 = vadd.f32 %v289_v50, %v288_v49 }
 0x154   : > { %385 = vpush %v290_v51 }
 0x185   : > { %s386_s21 = spop %385 }
 0x186   : > { %s292_s25 = smul.f32 0.03125, %s386_s21 }
 0x188   : > { %v293_v52 = vstv %s292_s25 }
 0x189   : > { %296 = vst.msk [vmem:[%s207_s24] sm:$0x1] %vm295_vm6, %v293_v52 }
 0x18a PF: > { %s12_s11 = sadd.s32 1, %s437_s11   ;;  %s503_s9 = smov %s433_s10 }
 0x18b   : > { %p9_p6 = scmp.ge.s32.totalorder %s12_s11, 4   ;;  %s504_s10 = smov %s506_s12 }
 0x18d   :  { %11 = sbr.rel (!%p9_p6) target bundleno = 2 (0x2), region = 69 }

</bundles_post_ra>
